<compile_context>
chip_gen: v7x
topology: tpu7x:2x2x1
jax: 0.10.0
libtpu: 0.0.40
codegen_flags: <defaults>
</compile_context>

<pallas_src>
import math
import functools

import jax
import jax.numpy as jnp
from jax.experimental import pallas as pl
from jax.experimental.pallas import tpu as pltpu


def _splora_matmul_kernel(x_ref, wt_ref, bias_ref, o_ref, acc_ref):
    """One (tm, tn) output tile; K (grid axis 2) is innermost / "arbitrary".

    x_ref    : [tm, tk]  compute dtype (bf16)
    wt_ref   : [tk, tn]  compute dtype  -- W pre-assembled in [in, out] layout
    bias_ref : [1,  tn]  f32
    o_ref    : [tm, tn]  output dtype
    acc_ref  : [tm, tn]  f32 VMEM accumulator
    """
    k = pl.program_id(2)

    @pl.when(k == 0)
    def _():
        # Fold the bias into the accumulator init (saves an epilogue VPU add).
        acc_ref[...] = jnp.broadcast_to(bias_ref[...], acc_ref.shape)

    acc_ref[...] += jnp.dot(
        x_ref[...], wt_ref[...], preferred_element_type=jnp.float32
    )

    @pl.when(k == pl.num_programs(2) - 1)
    def _():
        o_ref[...] = acc_ref[...].astype(o_ref.dtype)


def _round_up(a, b):
    return (a + b - 1) // b * b


def _choose_tile_and_pad(dim, target, unit):
    """Pick (tile, padded_dim).

    Pad `dim` only to `unit` granularity and pick a tile (multiple of `unit`,
    <= target) that divides the padded dim -> no full-tile padding, no wasted
    MXU steps. Fall back to tile-granularity padding only when no reasonable
    divisor exists (prime-ish dims)."""
    target = max(unit, (target // unit) * unit)
    rounded = _round_up(dim, unit)
    if rounded <= target:
        return rounded, rounded
    t = target
    while t >= unit and rounded % t != 0:
        t -= unit
    if t >= max(unit, target // 2):
        return t, rounded
    return target, _round_up(dim, target)


@functools.partial(
    jax.jit, static_argnames=("compute_dtype", "tm", "tn", "tk")
)
def splora_linear_forward(
    x,
    lora_B,
    lora_A,
    scaling,
    sparse_value,
    sparse_index,
    bias,
    *,
    compute_dtype=jnp.bfloat16,
    tm=1024,
    tn=1024,
    tk=512,
):
    """x: [..., in_features] -> [..., out_features]."""
    out_features, _ = lora_B.shape
    _, in_features = lora_A.shape

    # ---- Assemble W^T directly in [in, out] layout (no transpose pass). ----
    # Matches torch: W = B @ (A * scale); W.view(-1).scatter_add_(0, di, dv)
    # W^T = (A * scale)^T @ B^T
    wt = jnp.dot(
        lora_A.astype(jnp.float32).T * scaling,
        lora_B.astype(jnp.float32).T,
        preferred_element_type=jnp.float32,
    )
    # torch flat index i over W[out, in]: o = i // in, c = i % in.
    # The same element in the [in, out] layout lives at flat index c*out + o.
    idx_t = (sparse_index % in_features) * out_features + (
        sparse_index // in_features
    )
    wt = (
        wt.reshape(-1)
        .at[idx_t]
        .add(sparse_value.astype(jnp.float32))
        .reshape(in_features, out_features)
    )

    lead_shape = x.shape[:-1]
    x2d = x.reshape(-1, in_features)
    m = x2d.shape[0]
    out_dtype = x.dtype

    cbytes = jnp.dtype(compute_dtype).itemsize
    sub_m = {4: 8, 2: 16, 1: 32}.get(cbytes, 8)  # sublane unit for compute dtype

    tm_, m_pad = _choose_tile_and_pad(m, tm, sub_m)
    tk_, k_pad = _choose_tile_and_pad(in_features, tk, 128)
    tn_, n_pad = _choose_tile_and_pad(out_features, tn, 128)

    # v7x megacore: ensure a "parallel" axis has >= 2 tiles in the small-M case
    # so both TensorCores get work (no extra padding: tn_ stays a divisor).
    if m_pad // tm_ == 1 and n_pad // tn_ == 1 and n_pad >= 256:
        t = (n_pad // 2 // 128) * 128
        while n_pad % t != 0:
            t -= 128
        tn_ = t

    # Cast MXU operands to the compute dtype; accumulate in f32 in-kernel.
    x_p = jnp.pad(
        x2d.astype(compute_dtype), ((0, m_pad - m), (0, k_pad - in_features))
    )
    wt_p = jnp.pad(
        wt.astype(compute_dtype),
        ((0, k_pad - in_features), (0, n_pad - out_features)),
    )
    bias_p = jnp.pad(
        bias.astype(jnp.float32).reshape(1, out_features),
        ((0, 0), (0, n_pad - out_features)),
    )

    grid = (m_pad // tm_, n_pad // tn_, k_pad // tk_)

    # Derive the VMEM limit from the actual pipeline footprint (double-buffered
    # inputs/outputs + f32 accumulator), clamped to v7x's 64 MiB physical VMEM.
    obytes = jnp.dtype(out_dtype).itemsize
    vmem_bytes = (
        2 * tm_ * tk_ * cbytes      # x double buffer
        + 2 * tk_ * tn_ * cbytes    # W^T double buffer
        + 2 * tn_ * 4               # bias double buffer
        + 2 * tm_ * tn_ * obytes    # output double buffer
        + tm_ * tn_ * 4             # f32 accumulator scratch
    )
    vmem_limit = int(min(max(vmem_bytes * 3 // 2 + (4 << 20), 32 << 20), 64 << 20))

    out_p = pl.pallas_call(
        _splora_matmul_kernel,
        out_shape=jax.ShapeDtypeStruct((m_pad, n_pad), out_dtype),
        grid_spec=pltpu.PrefetchScalarGridSpec(
            num_scalar_prefetch=0,
            grid=grid,
            in_specs=[
                pl.BlockSpec((tm_, tk_), lambda i, j, k: (i, k)),  # x
                pl.BlockSpec((tk_, tn_), lambda i, j, k: (k, j)),  # W^T
                pl.BlockSpec((1, tn_), lambda i, j, k: (0, j)),    # bias
            ],
            out_specs=pl.BlockSpec((tm_, tn_), lambda i, j, k: (i, j)),
            scratch_shapes=[pltpu.VMEM((tm_, tn_), jnp.float32)],
        ),
        compiler_params=pltpu.CompilerParams(
            dimension_semantics=("parallel", "parallel", "arbitrary"),
            vmem_limit_bytes=vmem_limit,
        ),
    )(x_p, wt_p, bias_p)

    out2d = out_p[:m, :out_features]
    return out2d.reshape(*lead_shape, out_features)


def init_splora_params(key, in_features, out_features, r, sp_ratio, dtype=jnp.float32):
    """Deterministic parameter init mirroring SpLoRaLinear.__init__
    (lora_B is randomized here instead of zeros so the low-rank path is
    actually exercised by the test)."""
    k_bias, k_a, k_b, k_idx, k_val = jax.random.split(key, 5)

    # bias ~ U(-1/sqrt(out), 1/sqrt(out))
    ab = 1.0 / math.sqrt(out_features)
    bias = jax.random.uniform(k_bias, (out_features,), dtype, -ab, ab)

    # lora_A: kaiming_uniform(a=sqrt(5)) -> U(-1/sqrt(in), 1/sqrt(in))
    aa = 1.0 / math.sqrt(in_features)
    lora_A = jax.random.uniform(k_a, (r, in_features), dtype, -aa, aa)

    # lora_B: module inits to zeros; use small random values for a stronger test.
    lora_B = 0.1 * jax.random.normal(k_b, (out_features, r), dtype=dtype)

    # sparse indices: random perm of flat positions, first num_nonzeros, sorted
    total = in_features * out_features
    num_nonzeros = int(sp_ratio * total)
    perm = jax.random.permutation(k_idx, total)
    sparse_index = jnp.sort(perm[:num_nonzeros]).astype(jnp.int32)

    # sparse values ~ U(-1/sqrt(in), 1/sqrt(in))
    sparse_value = jax.random.uniform(k_val, (num_nonzeros,), dtype, -aa, aa)

    return bias, lora_A, lora_B, sparse_index, sparse_value


if __name__ == "__main__":
    # Small shapes consistent with the module's forward: x [batch, seq, in_features]
    batch, seq = 2, 8
    in_features, out_features, r = 32, 32, 4
    sp_ratio = 0.05
    lora_alpha = 1
    scaling = lora_alpha / r  # trainable_scaling=False

    key = jax.random.PRNGKey(0)
    k_params, k_x = jax.random.split(key)
    bias, lora_A, lora_B, sparse_index, sparse_value = init_splora_params(
        k_params, in_features, out_features, r, sp_ratio
    )
    x = jax.random.normal(k_x, (batch, seq, in_features), dtype=jnp.float32)

    out = splora_linear_forward(
        x, lora_B, lora_A, scaling, sparse_value, sparse_index, bias
    )
    out = jax.block_until_ready(out)

    # Reference check in plain JAX (full f32, same math, no Pallas).
    w_ref = (
        (lora_B @ (lora_A * scaling))
        .reshape(-1)
        .at[sparse_index]
        .add(sparse_value)
        .reshape(out_features, in_features)
    )
    ref = x.reshape(-1, in_features) @ w_ref.T + bias
    ref = ref.reshape(batch, seq, out_features)

    assert out.shape == (batch, seq, out_features)
    # bf16 MXU operands with f32 accumulation -> loosened tolerance vs f32 ref.
    assert jnp.allclose(out, ref, atol=2e-2, rtol=2e-2), (
        float(jnp.max(jnp.abs(out - ref)))
    )

    print("KERNEL_OK")
</pallas_src>

<mosaic_0001>
module attributes {stable_mosaic.version = 11 : i64} {
  func.func @_splora_matmul_kernel(%arg0: i32, %arg1: i32, %arg2: i32, %arg3: memref<16x128xbf16, #tpu.memory_space<vmem>>, %arg4: memref<128x128xbf16, #tpu.memory_space<vmem>>, %arg5: memref<1x128xf32, #tpu.memory_space<vmem>>, %arg6: memref<16x128xf32, #tpu.memory_space<vmem>>, %arg7: memref<16x128xf32, #tpu.memory_space<vmem>>) attributes {dimension_semantics = [#tpu.dimension_semantics<parallel>, #tpu.dimension_semantics<parallel>, #tpu.dimension_semantics<arbitrary>], iteration_bounds = array<i64: 1, 1, 1>, scalar_prefetch = 0 : i64, scratch_operands = 1 : i64, tpu.core_type = #tpu.core_type<tc>, window_params = [{transform_indices = @transform_0, window_bounds = array<i64: 16, 128>}, {transform_indices = @transform_1, window_bounds = array<i64: 128, 128>}, {transform_indices = @transform_2, window_bounds = array<i64: 1, 128>}, {transform_indices = @transform_3, window_bounds = array<i64: 16, 128>}]} {
    %c0_i32 = arith.constant 0 : i32
    %0 = arith.cmpi eq, %arg2, %c0_i32 : i32
    %1 = arith.extui %0 : i1 to i32
    %c0_i32_0 = arith.constant 0 : i32
    %2 = arith.cmpi ne, %1, %c0_i32_0 : i32
    scf.if %2 {
      %c0_10 = arith.constant 0 : index
      %c0_11 = arith.constant 0 : index
      %12 = vector.load %arg5[%c0_10, %c0_11] : memref<1x128xf32, #tpu.memory_space<vmem>>, vector<1x128xf32>
      %13 = vector.shape_cast %12 : vector<1x128xf32> to vector<1x128xf32>
      %14 = vector.broadcast %13 : vector<1x128xf32> to vector<16x128xf32>
      %c0_12 = arith.constant 0 : index
      %c0_13 = arith.constant 0 : index
      %15 = vector.load %arg7[%c0_12, %c0_13] : memref<16x128xf32, #tpu.memory_space<vmem>>, vector<16x128xf32>
      tpu.vector_store %arg7[%c0_12, %c0_13], %14 {strides = array<i32>} : memref<16x128xf32, #tpu.memory_space<vmem>>, vector<16x128xf32>,
    } else {
    }
    %c0 = arith.constant 0 : index
    %c0_1 = arith.constant 0 : index
    %3 = vector.load %arg7[%c0, %c0_1] : memref<16x128xf32, #tpu.memory_space<vmem>>, vector<16x128xf32>
    %c0_2 = arith.constant 0 : index
    %c0_3 = arith.constant 0 : index
    %4 = vector.load %arg3[%c0_2, %c0_3] : memref<16x128xbf16, #tpu.memory_space<vmem>>, vector<16x128xbf16>
    %c0_4 = arith.constant 0 : index
    %c0_5 = arith.constant 0 : index
    %5 = vector.load %arg4[%c0_4, %c0_5] : memref<128x128xbf16, #tpu.memory_space<vmem>>, vector<128x128xbf16>
    %cst = arith.constant dense<0.000000e+00> : vector<16x128xf32>
    %6 = tpu.matmul %4, %5, %cst {dimension_numbers = #tpu.dot_dimension_numbers<[1], [0], [0], [1], [0, 0, 1, 1], [], []>} : vector<16x128xbf16>, vector<128x128xbf16>, vector<16x128xf32> -> vector<16x128xf32>
    %7 = arith.addf %3, %6 : vector<16x128xf32>
    %c0_6 = arith.constant 0 : index
    %c0_7 = arith.constant 0 : index
    %8 = vector.load %arg7[%c0_6, %c0_7] : memref<16x128xf32, #tpu.memory_space<vmem>>, vector<16x128xf32>
    tpu.vector_store %arg7[%c0_6, %c0_7], %7 {strides = array<i32>} : memref<16x128xf32, #tpu.memory_space<vmem>>, vector<16x128xf32>,
    %c0_i32_8 = arith.constant 0 : i32
    %9 = arith.cmpi eq, %arg2, %c0_i32_8 : i32
    %10 = arith.extui %9 : i1 to i32
    %c0_i32_9 = arith.constant 0 : i32
    %11 = arith.cmpi ne, %10, %c0_i32_9 : i32
    scf.if %11 {
      %c0_10 = arith.constant 0 : index
      %c0_11 = arith.constant 0 : index
      %12 = vector.load %arg7[%c0_10, %c0_11] : memref<16x128xf32, #tpu.memory_space<vmem>>, vector<16x128xf32>
      %c0_12 = arith.constant 0 : index
      %c0_13 = arith.constant 0 : index
      %13 = vector.load %arg6[%c0_12, %c0_13] : memref<16x128xf32, #tpu.memory_space<vmem>>, vector<16x128xf32>
      tpu.vector_store %arg6[%c0_12, %c0_13], %12 {strides = array<i32>} : memref<16x128xf32, #tpu.memory_space<vmem>>, vector<16x128xf32>,
    } else {
    }
    return
  }
  func.func @transform_0(%arg0: i32, %arg1: i32, %arg2: i32) -> (i32, i32) {
    %c0_i32 = arith.constant 0 : i32
    return %arg0, %arg2 : i32, i32
  }
  func.func @transform_1(%arg0: i32, %arg1: i32, %arg2: i32) -> (i32, i32) {
    %c0_i32 = arith.constant 0 : i32
    return %arg2, %arg1 : i32, i32
  }
  func.func @transform_2(%arg0: i32, %arg1: i32, %arg2: i32) -> (i32, i32) {
    %c0_i32 = arith.constant 0 : i32
    %c0_i32_0 = arith.constant 0 : i32
    return %c0_i32, %arg1 : i32, i32
  }
  func.func @transform_3(%arg0: i32, %arg1: i32, %arg2: i32) -> (i32, i32) {
    %c0_i32 = arith.constant 0 : i32
    return %arg0, %arg1 : i32, i32
  }
}

</mosaic_0001>

<bundles_post_ra>
// kernel: splora_linear_forward.1
= control target key start
LH: loop header
LB: loop body
LE: loop exit
PB: predicated region body
PF: predicated region fallthrough
CT: control target
= control target key end

     0   :  { %v208_v0 = vmov 0.0   ;;  %vm209_vm0 = vmmov 0   ;;  %s266_s1 = inlined_call_operand.vmem [shape: bf16[128,128], index: 1, kind: input, shape index: {}]   ;;  %s267_s0 = inlined_call_operand.vmem [shape: bf16[16,128], index: 0, kind: input, shape index: {}]   ;;  %s268_s2 = inlined_call_operand.vmem [shape: f32[1,128], index: 2, kind: input, shape index: {}]   ;;  %s269_s3 = inlined_call_operand.vmem [shape: f32[16,128], index: 3, kind: output, shape index: {}]  }
   0x1   :  { %177 = vmatprep.subr.bf16.mxu0 %v208_v0  ;;  %v199_v1 = vld [vmem:[%s266_s1] sm:$0xff]   ;;  %193 = vmatprep.mubr.msk.bf16.mxu0 %vm209_vm0, %v208_v0  ;;  %v200_v2 = vld [vmem:[%s266_s1 + $0x8] sm:$0xff]   ;;  %v201_v3 = vld [vmem:[%s266_s1 + $0x10] sm:$0xff]  }
   0x2   :  { %178 = vmatpush3.bf16.msra.mxu0 %v199_v1  ;;  %v202_v4 = vld [vmem:[%s266_s1 + $0x18] sm:$0xff]   ;;  %v203_v5 = vld [vmem:[%s266_s1 + $0x20] sm:$0xff]   ;;  %v204_v6 = vld [vmem:[%s266_s1 + $0x28] sm:$0xff]  }
   0x3   :  { %179 = vmatprep.subr.bf16.mxu0 %v208_v0  ;;  %v205_v7 = vld [vmem:[%s266_s1 + $0x30] sm:$0xff]   ;;  %v206_v8 = vld [vmem:[%s266_s1 + $0x38] sm:$0xff]   ;;  %v207_v9 = vld [vmem:[%s267_s0] sm:$0xff]  }
   0x4   :  { %v158_v10 = vld [vmem:[%s268_s2] ss:$0 sm:$0xff] }
   0x6   :  { %180 = vmatpush3.bf16.msra.mxu0 %v200_v2 }
   0x7   :  { %181 = vmatprep.subr.bf16.mxu0 %v208_v0 }
   0xa   :  { %182 = vmatpush3.bf16.msra.mxu0 %v201_v3 }
   0xb   :  { %183 = vmatprep.subr.bf16.mxu0 %v208_v0 }
   0xe   :  { %184 = vmatpush3.bf16.msra.mxu0 %v202_v4 }
   0xf   :  { %185 = vmatprep.subr.bf16.mxu0 %v208_v0 }
  0x12   :  { %186 = vmatpush3.bf16.msra.mxu0 %v203_v5 }
  0x13   :  { %187 = vmatprep.subr.bf16.mxu0 %v208_v0 }
  0x16   :  { %188 = vmatpush3.bf16.msra.mxu0 %v204_v6 }
  0x17   :  { %189 = vmatprep.subr.bf16.mxu0 %v208_v0 }
  0x1a   :  { %190 = vmatpush3.bf16.msra.mxu0 %v205_v7 }
  0x1b   :  { %191 = vmatprep.subr.bf16.mxu0 %v208_v0 }
  0x1e   :  { %192 = vmatpush3.bf16.msra.mxu0 %v206_v8 }
  0x21   :  { %194 = vmatmul.mubr.bf16.vlgmr.msra.gmra.mrb[0].mxu0 %v207_v9 }
  0xf4   :  { %v136_v11 = vpop.f32.mrb[0].mxu0 }
  0xf5   :  { %v143_v12 = vadd.f32 %v158_v10, %v136_v11  ;;  %v195_v13 = vpop.f32.mrb[1].mxu0 }
  0xf6   :  { %v139_v14 = vpop.f32.mrb[2].mxu0 }
  0xf7   :  { %152 = vst [vmem:[%s269_s3] sm:$0xff] %v143_v12  ;;  %v144_v15 = vadd.f32 %v158_v10, %v139_v14  ;;  %v196_v16 = vpop.f32.mrb[3].mxu0 }
  0xf9   :  { %153 = vst [vmem:[%s269_s3 + $0x8] sm:$0xff] %v144_v15 }

</bundles_post_ra>
